<compile_context>
chip_gen: v7x
topology: tpu7x:2x2x1
jax: 0.10.0
libtpu: 0.0.40
codegen_flags: <defaults>
</compile_context>

<pallas_src>
import functools

import jax
import jax.numpy as jnp
from jax.experimental import pallas as pl
from jax.experimental.pallas import tpu as pltpu


_VMEM_SPEC = pl.BlockSpec(memory_space=pltpu.MemorySpace.VMEM)
_NEG = -1.0e30  # finite "minus infinity" (avoids inf-inf NaNs on padded tiles)


# --------------------------------------------------------------------------
# Tile / VMEM sizing helpers (per-generation)
# --------------------------------------------------------------------------
def _vmem_capacity_bytes() -> int:
    try:
        return int(pltpu.get_tpu_info().vmem_capacity_bytes)
    except Exception:
        return 64 * 1024 * 1024  # conservative default (v7x per-TC VMEM)


def _choose_ce_tiles(B: int, C: int, itemsize: int):
    """Pick (TB, TC) so one logits block stays within ~VMEM/16 (2x buffered)."""
    vmem = _vmem_capacity_bytes()
    per_buf_budget = max(vmem // 16, 1 << 20)
    TB = B if B <= 256 else 256          # 256 is a multiple of 8 (sublane rule)
    if C <= 512:
        TC = C                            # whole class dim (full-dim block OK)
    else:
        tc = per_buf_budget // max(TB * itemsize, 1)
        tc = (tc // 128) * 128            # lane rule: multiple of 128
        tc = max(512, min(tc, 4096))
        TC = C if tc >= C else tc
    return TB, TC


def _vmem_limit_bytes(TB: int, TC: int, itemsize: int, extra: int) -> int:
    need = 2 * TB * TC * itemsize + extra + (4 << 20)   # double-buffer + headroom
    cap = _vmem_capacity_bytes()
    return int(max(min(need, cap - (2 << 20)), 16 << 20))


# --------------------------------------------------------------------------
# In-kernel math helpers
# --------------------------------------------------------------------------
def _softmax_ce_rows(x, lab, eps: float):
    """Whole-block CE with optional label smoothing -> (1,1) batch mean.

    x: (b, c) f32, lab: (b, 1) int32.
    """
    b, c = x.shape
    m = jnp.max(x, axis=-1, keepdims=True)
    lse = m + jnp.log(jnp.sum(jnp.exp(x - m), axis=-1, keepdims=True))
    cls = jax.lax.broadcasted_iota(jnp.int32, (b, c), 1)
    tgt = jnp.sum(jnp.where(cls == lab, x, 0.0), axis=-1, keepdims=True)
    nll = lse - tgt
    if eps > 0.0:
        smooth = lse - jnp.sum(x, axis=-1, keepdims=True) / float(c)
        nll = (1.0 - eps) * nll + eps * smooth
    return jnp.sum(nll, axis=0, keepdims=True) / float(b)          # (1,1)


def _bce_rows(x, z):
    """BCE-with-logits mean -> (1,1).  x, z: (1, n) f32."""
    n = x.shape[-1]
    per = jnp.maximum(x, 0.0) - x * z + jnp.log1p(jnp.exp(-jnp.abs(x)))
    return jnp.sum(per, axis=-1, keepdims=True) / float(n)          # (1,1)


def _online_lse_step(x_ref, lab_ref, m_sc, l_sc, t_sc, s_sc,
                     *, k, TC: int, C: int, need_sum: bool):
    """One class-tile update of running (max, sumexp, target-logit[, sum])."""
    x = x_ref[...].astype(jnp.float32)                               # (TB, TC)
    lab = lab_ref[...]                                               # (TB, 1)
    col = jax.lax.broadcasted_iota(jnp.int32, x.shape, 1) + k * TC
    valid = col < C                                                  # mask OOB pad
    xm = jnp.where(valid, x, _NEG)
    m_new = jnp.maximum(m_sc[...], jnp.max(xm, axis=-1, keepdims=True))
    alpha = jnp.exp(m_sc[...] - m_new)
    l_sc[...] = alpha * l_sc[...] + jnp.sum(jnp.exp(xm - m_new), axis=-1,
                                            keepdims=True)
    t_sc[...] = t_sc[...] + jnp.sum(jnp.where(col == lab, x, 0.0), axis=-1,
                                    keepdims=True)
    if need_sum:
        s_sc[...] = s_sc[...] + jnp.sum(jnp.where(valid, x, 0.0), axis=-1,
                                        keepdims=True)
    m_sc[...] = m_new


def _online_lse_finish(m_sc, l_sc, t_sc, s_sc, *, eps: float, C: int, row0, B: int):
    """Per-row CE from the running stats, masked batch-tile sum -> (1,1)."""
    lse = m_sc[...] + jnp.log(l_sc[...])                             # (TB,1)
    nll = lse - t_sc[...]
    if eps > 0.0:
        smooth = lse - s_sc[...] / float(C)
        nll = (1.0 - eps) * nll + eps * smooth
    row = jax.lax.broadcasted_iota(jnp.int32, nll.shape, 0) + row0
    nll = jnp.where(row < B, nll, 0.0)                               # mask pad rows
    return jnp.sum(nll, keepdims=True)                               # (1,1)


def _pack_result_tile(arc_partial, g, v):
    """Pack scalars into one lane-dense (8,128) tile: [0,0]=arc, [0,1]=g, [0,2]=v."""
    r = jax.lax.broadcasted_iota(jnp.int32, (8, 128), 0)
    c = jax.lax.broadcasted_iota(jnp.int32, (8, 128), 1)
    zero = jnp.zeros((8, 128), jnp.float32)
    return jnp.where((r == 0) & (c == 0), arc_partial,
           jnp.where((r == 0) & (c == 1), g,
           jnp.where((r == 0) & (c == 2), v, zero)))


# --------------------------------------------------------------------------
# Kernels
# --------------------------------------------------------------------------
def _fused_loss_kernel(g_logits_ref, g_labels_ref,
                       a_logits_ref, a_labels_ref,
                       sim_ref, ver_ref,
                       out_ref, m_sc, l_sc, t_sc,
                       *, eps: float, B: int, C: int, TB: int, TC: int):
    """Grid = (batch tiles, arcface class tiles).  Class axis is the reduction."""
    i = pl.program_id(0)
    k = pl.program_id(1)
    nk = pl.num_programs(1)

    @pl.when(k == 0)
    def _init():
        m_sc[...] = jnp.full(m_sc.shape, _NEG, dtype=m_sc.dtype)
        l_sc[...] = jnp.zeros(l_sc.shape, dtype=l_sc.dtype)
        t_sc[...] = jnp.zeros(t_sc.shape, dtype=t_sc.dtype)

    # Arcface online log-sum-exp + target-logit for this class tile.
    _online_lse_step(a_logits_ref, a_labels_ref, m_sc, l_sc, t_sc, None,
                     k=k, TC=TC, C=C, need_sum=False)

    @pl.when(k == nk - 1)
    def _finish():
        # Arcface partial sum over this batch tile (eps=0: plain CE).
        arc_partial = _online_lse_finish(m_sc, l_sc, t_sc, None,
                                         eps=0.0, C=C, row0=i * TB, B=B)
        # Gender CE (label smoothing) and verification BCE on their small
        # whole-array blocks (a few KB; recomputed per batch tile is free).
        g = _softmax_ce_rows(g_logits_ref[...].astype(jnp.float32),
                             g_labels_ref[...], eps)
        v = _bce_rows(sim_ref[...].astype(jnp.float32),
                      ver_ref[...].astype(jnp.float32))
        out_ref[...] = _pack_result_tile(arc_partial, g, v)


def _ce_tiled_kernel(logits_ref, labels_ref, out_ref, m_sc, l_sc, t_sc, s_sc,
                     *, eps: float, B: int, C: int, TB: int, TC: int):
    """Standalone class-tiled cross-entropy (used by the fallback path)."""
    i = pl.program_id(0)
    k = pl.program_id(1)
    nk = pl.num_programs(1)

    @pl.when(k == 0)
    def _init():
        m_sc[...] = jnp.full(m_sc.shape, _NEG, dtype=m_sc.dtype)
        l_sc[...] = jnp.zeros(l_sc.shape, dtype=l_sc.dtype)
        t_sc[...] = jnp.zeros(t_sc.shape, dtype=t_sc.dtype)
        s_sc[...] = jnp.zeros(s_sc.shape, dtype=s_sc.dtype)

    _online_lse_step(logits_ref, labels_ref, m_sc, l_sc, t_sc, s_sc,
                     k=k, TC=TC, C=C, need_sum=(eps > 0.0))

    @pl.when(k == nk - 1)
    def _finish():
        partial = _online_lse_finish(m_sc, l_sc, t_sc, s_sc,
                                     eps=eps, C=C, row0=i * TB, B=B)
        zero = jnp.zeros((1, 1), jnp.float32)
        out_ref[...] = _pack_result_tile(partial, zero, zero)


def _bce_kernel(logits_ref, targets_ref, out_ref):
    out_ref[...] = _bce_rows(logits_ref[...].astype(jnp.float32),
                             targets_ref[...].astype(jnp.float32))


# --------------------------------------------------------------------------
# Wrappers
# --------------------------------------------------------------------------
@functools.partial(jax.jit, static_argnames=("eps", "wg", "wa", "wv"))
def _fused_combined_loss(gender_logits, gender_labels,
                         arcface_logits, identity_labels,
                         similarity, verification,
                         *, eps: float, wg: float, wa: float, wv: float):
    B, C = arcface_logits.shape
    Bg, Cg = gender_logits.shape
    g_lab = gender_labels.reshape(-1, 1).astype(jnp.int32)
    a_lab = identity_labels.reshape(-1, 1).astype(jnp.int32)
    sim2d = similarity.reshape(1, -1)                       # native dtype on wire
    ver2d = verification.reshape(1, -1).astype(jnp.float32)  # mirrors .float()
    N = sim2d.shape[1]

    itemsize = arcface_logits.dtype.itemsize
    TB, TC = _choose_ce_tiles(B, C, itemsize)
    nb = pl.cdiv(B, TB)
    nk = pl.cdiv(C, TC)

    small = (Bg * Cg * gender_logits.dtype.itemsize + Bg * 4 + TB * 4
             + 2 * N * 4 + 8 * 128 * 4)
    vmem_limit = _vmem_limit_bytes(TB, TC, itemsize, 2 * small + 3 * TB * 4)

    cost = pl.CostEstimate(
        flops=6 * B * C + 12 * Bg * Cg + 12 * N,
        transcendentals=B * C + Bg * Cg + N + 2 * B,
        bytes_accessed=(B * C * itemsize
                        + Bg * Cg * gender_logits.dtype.itemsize
                        + (B + Bg) * 4 + 2 * N * 4 + nb * 8 * 128 * 4))

    out = pl.pallas_call(
        functools.partial(_fused_loss_kernel, eps=float(eps),
                          B=B, C=C, TB=TB, TC=TC),
        out_shape=jax.ShapeDtypeStruct((nb * 8, 128), jnp.float32),
        grid_spec=pltpu.PrefetchScalarGridSpec(
            num_scalar_prefetch=0,
            grid=(nb, nk),
            in_specs=[
                pl.BlockSpec((Bg, Cg), lambda i, k: (0, 0)),   # gender logits
                pl.BlockSpec((Bg, 1), lambda i, k: (0, 0)),    # gender labels
                pl.BlockSpec((TB, TC), lambda i, k: (i, k)),   # arcface logits
                pl.BlockSpec((TB, 1), lambda i, k: (i, 0)),    # arcface labels
                pl.BlockSpec((1, N), lambda i, k: (0, 0)),     # similarity
                pl.BlockSpec((1, N), lambda i, k: (0, 0)),     # verification
            ],
            out_specs=pl.BlockSpec((8, 128), lambda i, k: (i, 0)),
            scratch_shapes=[pltpu.VMEM((TB, 1), jnp.float32)] * 3),
        compiler_params=pltpu.CompilerParams(
            dimension_semantics=("parallel", "arbitrary"),
            vmem_limit_bytes=vmem_limit),
        cost_estimate=cost,
    )(gender_logits, g_lab, arcface_logits, a_lab, sim2d, ver2d)

    out3 = out.reshape(nb, 8, 128)
    a = jnp.sum(out3[:, 0, 0]) / float(B)     # arcface mean over all batch tiles
    g = out3[0, 0, 1]
    v = out3[0, 0, 2]
    t = wg * g + wa * a + wv * v
    return g, a, v, t


@functools.partial(jax.jit, static_argnames=("label_smoothing",))
def cross_entropy_loss(logits, labels, label_smoothing: float = 0.0):
    """PyTorch-style nn.CrossEntropyLoss(label_smoothing=...) (mean), class-tiled."""
    B, C = logits.shape
    lab = labels.reshape(-1, 1).astype(jnp.int32)
    itemsize = logits.dtype.itemsize
    TB, TC = _choose_ce_tiles(B, C, itemsize)
    nb = pl.cdiv(B, TB)
    nk = pl.cdiv(C, TC)
    vmem_limit = _vmem_limit_bytes(TB, TC, itemsize,
                                   2 * (TB * 4 + 8 * 128 * 4) + 4 * TB * 4)
    out = pl.pallas_call(
        functools.partial(_ce_tiled_kernel, eps=float(label_smoothing),
                          B=B, C=C, TB=TB, TC=TC),
        out_shape=jax.ShapeDtypeStruct((nb * 8, 128), jnp.float32),
        grid_spec=pltpu.PrefetchScalarGridSpec(
            num_scalar_prefetch=0,
            grid=(nb, nk),
            in_specs=[pl.BlockSpec((TB, TC), lambda i, k: (i, k)),
                      pl.BlockSpec((TB, 1), lambda i, k: (i, 0))],
            out_specs=pl.BlockSpec((8, 128), lambda i, k: (i, 0)),
            scratch_shapes=[pltpu.VMEM((TB, 1), jnp.float32)] * 4),
        compiler_params=pltpu.CompilerParams(
            dimension_semantics=("parallel", "arbitrary"),
            vmem_limit_bytes=vmem_limit),
        cost_estimate=pl.CostEstimate(
            flops=6 * B * C, transcendentals=B * C + 2 * B,
            bytes_accessed=B * C * itemsize + B * 4 + nb * 8 * 128 * 4),
    )(logits, lab)
    return jnp.sum(out.reshape(nb, 8, 128)[:, 0, 0]) / float(B)


@jax.jit
def bce_with_logits_loss(logits, targets):
    """PyTorch-style nn.BCEWithLogitsLoss (mean)."""
    out = pl.pallas_call(
        _bce_kernel,
        out_shape=jax.ShapeDtypeStruct((1, 1), jnp.float32),
        in_specs=[_VMEM_SPEC, _VMEM_SPEC],
        out_specs=_VMEM_SPEC,
    )(logits.reshape(1, -1), targets.reshape(1, -1).astype(jnp.float32))
    return out[0, 0]


# --------------------------------------------------------------------------
# Module equivalent
# --------------------------------------------------------------------------
class Config:
    LABEL_SMOOTHING = 0.1
    GENDER_LOSS_WEIGHT = 1.0
    ARCFACE_LOSS_WEIGHT = 1.0
    VERIFICATION_LOSS_WEIGHT = 0.5


class FinalCombinedLoss:
    """JAX/Pallas port of the PyTorch FinalCombinedLoss module.

    Returns (total_loss, loss_dict); loss_dict holds jnp scalars (no host
    syncs in the hot path; convert to Python floats only when logging).
    """

    def __init__(self, config):
        self.label_smoothing = float(config.LABEL_SMOOTHING)
        self.gender_weight = float(config.GENDER_LOSS_WEIGHT)
        self.arcface_weight = float(config.ARCFACE_LOSS_WEIGHT)
        self.verification_weight = float(config.VERIFICATION_LOSS_WEIGHT)

    def __call__(self, outputs, targets):
        has_g = "gender" in outputs and "gender" in targets
        has_a = "arcface_logits" in outputs and "identity" in targets
        has_v = "similarity" in outputs and "verification" in targets

        loss_dict = {}

        if has_g and has_a and has_v:
            # Fast path: one fused, class-tiled pallas_call for all three heads.
            g, a, v, t = _fused_combined_loss(
                outputs["gender"], targets["gender"],
                outputs["arcface_logits"], targets["identity"],
                outputs["similarity"], targets["verification"],
                eps=self.label_smoothing,
                wg=self.gender_weight,
                wa=self.arcface_weight,
                wv=self.verification_weight)
            loss_dict["gender_loss"] = g
            loss_dict["arcface_loss"] = a
            loss_dict["verification_loss"] = v
            loss_dict["total_loss"] = t
            return t, loss_dict

        # Fallback path: per-loss kernels for partial key combinations.
        total_loss = jnp.float32(0.0)
        if has_g:
            g = cross_entropy_loss(outputs["gender"], targets["gender"],
                                   label_smoothing=self.label_smoothing)
            total_loss = total_loss + self.gender_weight * g
            loss_dict["gender_loss"] = g
        if has_a:
            a = cross_entropy_loss(outputs["arcface_logits"],
                                   targets["identity"], label_smoothing=0.0)
            total_loss = total_loss + self.arcface_weight * a
            loss_dict["arcface_loss"] = a
        if has_v:
            v = bce_with_logits_loss(outputs["similarity"],
                                     targets["verification"])
            total_loss = total_loss + self.verification_weight * v
            loss_dict["verification_loss"] = v
        loss_dict["total_loss"] = total_loss
        return total_loss, loss_dict


# --------------------------------------------------------------------------
# Main
# --------------------------------------------------------------------------
if __name__ == "__main__":
    key = jax.random.PRNGKey(0)
    k1, k2, k3, k4, k5, k6 = jax.random.split(key, 6)

    batch = 8
    num_genders = 2
    num_identities = 16

    outputs = {
        "gender": jax.random.normal(k1, (batch, num_genders), dtype=jnp.float32),
        "arcface_logits": jax.random.normal(
            k2, (batch, num_identities), dtype=jnp.float32) * 4.0,
        "similarity": jax.random.normal(k3, (batch,), dtype=jnp.float32),
    }
    targets = {
        "gender": jax.random.randint(k4, (batch,), 0, num_genders, dtype=jnp.int32),
        "identity": jax.random.randint(
            k5, (batch,), 0, num_identities, dtype=jnp.int32),
        "verification": jax.random.bernoulli(k6, 0.5, (batch,)).astype(jnp.float32),
    }

    criterion = FinalCombinedLoss(Config())
    total_loss, loss_dict = criterion(outputs, targets)
    jax.block_until_ready(total_loss)

    # --- pure-JAX reference sanity check ---
    def ref_ce(x, lab, eps=0.0):
        x = x.astype(jnp.float32)
        m = jnp.max(x, axis=-1)
        lse = m + jnp.log(jnp.sum(jnp.exp(x - m[:, None]), axis=-1))
        tgt = jnp.take_along_axis(x, lab.astype(jnp.int32)[:, None], axis=-1)[:, 0]
        nll = lse - tgt
        if eps > 0.0:
            nll = (1.0 - eps) * nll + eps * (lse - jnp.mean(x, axis=-1))
        return jnp.mean(nll)

    def ref_bce(x, z):
        x = x.astype(jnp.float32)
        z = z.astype(jnp.float32)
        return jnp.mean(jnp.maximum(x, 0.0) - x * z
                        + jnp.log1p(jnp.exp(-jnp.abs(x))))

    ref_g = ref_ce(outputs["gender"], targets["gender"], Config.LABEL_SMOOTHING)
    ref_a = ref_ce(outputs["arcface_logits"], targets["identity"])
    ref_v = ref_bce(outputs["similarity"], targets["verification"])
    ref_t = (Config.GENDER_LOSS_WEIGHT * ref_g
             + Config.ARCFACE_LOSS_WEIGHT * ref_a
             + Config.VERIFICATION_LOSS_WEIGHT * ref_v)
    assert abs(float(total_loss) - float(ref_t)) < 1e-3, (
        float(total_loss), float(ref_t))
    assert abs(float(loss_dict["arcface_loss"]) - float(ref_a)) < 1e-3

    # Exercise the fallback (per-loss kernel) path as well.
    partial_total, _ = criterion(
        {"gender": outputs["gender"], "similarity": outputs["similarity"]},
        {"gender": targets["gender"], "verification": targets["verification"]})
    jax.block_until_ready(partial_total)
    ref_partial = (Config.GENDER_LOSS_WEIGHT * ref_g
                   + Config.VERIFICATION_LOSS_WEIGHT * ref_v)
    assert abs(float(partial_total) - float(ref_partial)) < 1e-3

    print("KERNEL_OK")
</pallas_src>

<mosaic_0001>
module attributes {stable_mosaic.version = 11 : i64} {
  func.func @_fused_loss_kernel(%arg0: i32, %arg1: i32, %arg2: memref<8x2xf32, #tpu.memory_space<vmem>>, %arg3: memref<8x1xi32, #tpu.memory_space<vmem>>, %arg4: memref<8x16xf32, #tpu.memory_space<vmem>>, %arg5: memref<8x1xi32, #tpu.memory_space<vmem>>, %arg6: memref<1x8xf32, #tpu.memory_space<vmem>>, %arg7: memref<1x8xf32, #tpu.memory_space<vmem>>, %arg8: memref<8x128xf32, #tpu.memory_space<vmem>>, %arg9: memref<8x1xf32, #tpu.memory_space<vmem>>, %arg10: memref<8x1xf32, #tpu.memory_space<vmem>>, %arg11: memref<8x1xf32, #tpu.memory_space<vmem>>) attributes {dimension_semantics = [#tpu.dimension_semantics<parallel>, #tpu.dimension_semantics<arbitrary>], iteration_bounds = array<i64: 1, 1>, scalar_prefetch = 0 : i64, scratch_operands = 3 : i64, tpu.core_type = #tpu.core_type<tc>, window_params = [{pipeline_mode = #tpu.pipeline_mode<synchronous>, transform_indices = @transform_0, window_bounds = array<i64: 8, 2>}, {pipeline_mode = #tpu.pipeline_mode<synchronous>, transform_indices = @transform_1, window_bounds = array<i64: 8, 1>}, {transform_indices = @transform_2, window_bounds = array<i64: 8, 16>}, {transform_indices = @transform_3, window_bounds = array<i64: 8, 1>}, {pipeline_mode = #tpu.pipeline_mode<synchronous>, transform_indices = @transform_4, window_bounds = array<i64: 1, 8>}, {pipeline_mode = #tpu.pipeline_mode<synchronous>, transform_indices = @transform_5, window_bounds = array<i64: 1, 8>}, {transform_indices = @transform_6, window_bounds = array<i64: 8, 128>}]} {
    %c0_i32 = arith.constant 0 : i32
    %0 = arith.cmpi eq, %arg1, %c0_i32 : i32
    %1 = arith.extui %0 : i1 to i32
    %c0_i32_0 = arith.constant 0 : i32
    %2 = arith.cmpi ne, %1, %c0_i32_0 : i32
    scf.if %2 {
      %cst_25 = arith.constant -1.000000e+30 : f32
      %42 = vector.broadcast %cst_25 : f32 to vector<8x1xf32>
      %c0_26 = arith.constant 0 : index
      %c0_27 = arith.constant 0 : index
      %43 = vector.load %arg9[%c0_26, %c0_27] : memref<8x1xf32, #tpu.memory_space<vmem>>, vector<8x1xf32>
      tpu.vector_store %arg9[%c0_26, %c0_27], %42 {strides = array<i32>} : memref<8x1xf32, #tpu.memory_space<vmem>>, vector<8x1xf32>,
      %cst_28 = arith.constant 0.000000e+00 : f32
      %44 = vector.broadcast %cst_28 : f32 to vector<8x1xf32>
      %c0_29 = arith.constant 0 : index
      %c0_30 = arith.constant 0 : index
      %45 = vector.load %arg10[%c0_29, %c0_30] : memref<8x1xf32, #tpu.memory_space<vmem>>, vector<8x1xf32>
      tpu.vector_store %arg10[%c0_29, %c0_30], %44 {strides = array<i32>} : memref<8x1xf32, #tpu.memory_space<vmem>>, vector<8x1xf32>,
      %cst_31 = arith.constant 0.000000e+00 : f32
      %46 = vector.broadcast %cst_31 : f32 to vector<8x1xf32>
      %c0_32 = arith.constant 0 : index
      %c0_33 = arith.constant 0 : index
      %47 = vector.load %arg11[%c0_32, %c0_33] : memref<8x1xf32, #tpu.memory_space<vmem>>, vector<8x1xf32>
      tpu.vector_store %arg11[%c0_32, %c0_33], %46 {strides = array<i32>} : memref<8x1xf32, #tpu.memory_space<vmem>>, vector<8x1xf32>,
    } else {
    }
    %c0 = arith.constant 0 : index
    %c0_1 = arith.constant 0 : index
    %3 = vector.load %arg4[%c0, %c0_1] : memref<8x16xf32, #tpu.memory_space<vmem>>, vector<8x16xf32>
    %c0_2 = arith.constant 0 : index
    %c0_3 = arith.constant 0 : index
    %4 = vector.load %arg5[%c0_2, %c0_3] : memref<8x1xi32, #tpu.memory_space<vmem>>, vector<8x1xi32>
    %5 = tpu.iota {dimensions = array<i32: 1>} : vector<8x16xi32>
    %c16_i32 = arith.constant 16 : i32
    %6 = arith.muli %arg1, %c16_i32 : i32
    %7 = vector.broadcast %6 : i32 to vector<8x16xi32>
    %8 = arith.addi %5, %7 : vector<8x16xi32>
    %c16_i32_4 = arith.constant 16 : i32
    %9 = vector.broadcast %c16_i32_4 : i32 to vector<8x16xi32>
    %10 = arith.cmpi slt, %8, %9 : vector<8x16xi32>
    %cst = arith.constant -1.000000e+30 : f32
    %11 = vector.broadcast %cst : f32 to vector<8x16xf32>
    %12 = arith.select %10, %3, %11 : vector<8x16xi1>, vector<8x16xf32>
    %c0_5 = arith.constant 0 : index
    %c0_6 = arith.constant 0 : index
    %13 = vector.load %arg9[%c0_5, %c0_6] : memref<8x1xf32, #tpu.memory_space<vmem>>, vector<8x1xf32>
    %cst_7 = arith.constant dense<0xFF800000> : vector<8xf32>
    %14 = vector.multi_reduction <maximumf>, %12, %cst_7 [1] : vector<8x16xf32> to vector<8xf32>
    %15 = vector.shape_cast %14 : vector<8xf32> to vector<8x1xf32>
    %16 = arith.maximumf %13, %15 : vector<8x1xf32>
    %c0_8 = arith.constant 0 : index
    %c0_9 = arith.constant 0 : index
    %17 = vector.load %arg9[%c0_8, %c0_9] : memref<8x1xf32, #tpu.memory_space<vmem>>, vector<8x1xf32>
    %18 = arith.subf %17, %16 : vector<8x1xf32>
    %19 = math.exp %18 : vector<8x1xf32>
    %c0_10 = arith.constant 0 : index
    %c0_11 = arith.constant 0 : index
    %20 = vector.load %arg10[%c0_10, %c0_11] : memref<8x1xf32, #tpu.memory_space<vmem>>, vector<8x1xf32>
    %21 = arith.mulf %19, %20 : vector<8x1xf32>
    %22 = vector.broadcast %16 : vector<8x1xf32> to vector<8x16xf32>
    %23 = arith.subf %12, %22 : vector<8x16xf32>
    %24 = math.exp %23 : vector<8x16xf32>
    %cst_12 = arith.constant dense<0.000000e+00> : vector<8xf32>
    %25 = vector.multi_reduction <add>, %24, %cst_12 [1] : vector<8x16xf32> to vector<8xf32>
    %26 = vector.shape_cast %25 : vector<8xf32> to vector<8x1xf32>
    %27 = arith.addf %21, %26 : vector<8x1xf32>
    %c0_13 = arith.constant 0 : index
    %c0_14 = arith.constant 0 : index
    %28 = vector.load %arg10[%c0_13, %c0_14] : memref<8x1xf32, #tpu.memory_space<vmem>>, vector<8x1xf32>
    tpu.vector_store %arg10[%c0_13, %c0_14], %27 {strides = array<i32>} : memref<8x1xf32, #tpu.memory_space<vmem>>, vector<8x1xf32>,
    %c0_15 = arith.constant 0 : index
    %c0_16 = arith.constant 0 : index
    %29 = vector.load %arg11[%c0_15, %c0_16] : memref<8x1xf32, #tpu.memory_space<vmem>>, vector<8x1xf32>
    %30 = vector.broadcast %4 : vector<8x1xi32> to vector<8x16xi32>
    %31 = arith.cmpi eq, %8, %30 : vector<8x16xi32>
    %cst_17 = arith.constant 0.000000e+00 : f32
    %32 = vector.broadcast %cst_17 : f32 to vector<8x16xf32>
    %33 = arith.select %31, %3, %32 : vector<8x16xi1>, vector<8x16xf32>
    %cst_18 = arith.constant dense<0.000000e+00> : vector<8xf32>
    %34 = vector.multi_reduction <add>, %33, %cst_18 [1] : vector<8x16xf32> to vector<8xf32>
    %35 = vector.shape_cast %34 : vector<8xf32> to vector<8x1xf32>
    %36 = arith.addf %29, %35 : vector<8x1xf32>
    %c0_19 = arith.constant 0 : index
    %c0_20 = arith.constant 0 : index
    %37 = vector.load %arg11[%c0_19, %c0_20] : memref<8x1xf32, #tpu.memory_space<vmem>>, vector<8x1xf32>
    tpu.vector_store %arg11[%c0_19, %c0_20], %36 {strides = array<i32>} : memref<8x1xf32, #tpu.memory_space<vmem>>, vector<8x1xf32>,
    %c0_21 = arith.constant 0 : index
    %c0_22 = arith.constant 0 : index
    %38 = vector.load %arg9[%c0_21, %c0_22] : memref<8x1xf32, #tpu.memory_space<vmem>>, vector<8x1xf32>
    tpu.vector_store %arg9[%c0_21, %c0_22], %16 {strides = array<i32>} : memref<8x1xf32, #tpu.memory_space<vmem>>, vector<8x1xf32>,
    %c0_i32_23 = arith.constant 0 : i32
    %39 = arith.cmpi eq, %arg1, %c0_i32_23 : i32
    %40 = arith.extui %39 : i1 to i32
    %c0_i32_24 = arith.constant 0 : i32
    %41 = arith.cmpi ne, %40, %c0_i32_24 : i32
    scf.if %41 {
      %c8_i32 = arith.constant 8 : i32
      %42 = arith.muli %arg0, %c8_i32 : i32
      %c0_25 = arith.constant 0 : index
      %c0_26 = arith.constant 0 : index
      %43 = vector.load %arg9[%c0_25, %c0_26] : memref<8x1xf32, #tpu.memory_space<vmem>>, vector<8x1xf32>
      %c0_27 = arith.constant 0 : index
      %c0_28 = arith.constant 0 : index
      %44 = vector.load %arg10[%c0_27, %c0_28] : memref<8x1xf32, #tpu.memory_space<vmem>>, vector<8x1xf32>
      %45 = math.log %44 : vector<8x1xf32>
      %46 = arith.addf %43, %45 : vector<8x1xf32>
      %c0_29 = arith.constant 0 : index
      %c0_30 = arith.constant 0 : index
      %47 = vector.load %arg11[%c0_29, %c0_30] : memref<8x1xf32, #tpu.memory_space<vmem>>, vector<8x1xf32>
      %48 = arith.subf %46, %47 : vector<8x1xf32>
      %49 = tpu.iota {dimensions = array<i32: 0>} : vector<8x1xi32>
      %50 = vector.broadcast %42 : i32 to vector<8x1xi32>
      %51 = arith.addi %49, %50 : vector<8x1xi32>
      %c8_i32_31 = arith.constant 8 : i32
      %52 = vector.broadcast %c8_i32_31 : i32 to vector<8x1xi32>
      %53 = arith.cmpi slt, %51, %52 : vector<8x1xi32>
      %cst_32 = arith.constant 0.000000e+00 : f32
      %54 = vector.broadcast %cst_32 : f32 to vector<8x1xf32>
      %55 = arith.select %53, %48, %54 : vector<8x1xi1>, vector<8x1xf32>
      %56 = vector.shape_cast %55 : vector<8x1xf32> to vector<1x8x1xf32>
      %cst_33 = arith.constant dense<0.000000e+00> : vector<1xf32>
      %57 = vector.multi_reduction <add>, %56, %cst_33 [1, 2] : vector<1x8x1xf32> to vector<1xf32>
      %58 = vector.shape_cast %57 : vector<1xf32> to vector<1x1x1xf32>
      %59 = vector.extract %58[0, 0, 0] : f32 from vector<1x1x1xf32>
      %60 = vector.broadcast %59 : f32 to vector<1x1xf32>
      %c0_34 = arith.constant 0 : index
      %c0_35 = arith.constant 0 : index
      %61 = vector.load %arg2[%c0_34, %c0_35] : memref<8x2xf32, #tpu.memory_space<vmem>>, vector<8x2xf32>
      %c0_36 = arith.constant 0 : index
      %c0_37 = arith.constant 0 : index
      %62 = vector.load %arg3[%c0_36, %c0_37] : memref<8x1xi32, #tpu.memory_space<vmem>>, vector<8x1xi32>
      %cst_38 = arith.constant dense<0xFF800000> : vector<8xf32>
      %63 = vector.multi_reduction <maximumf>, %61, %cst_38 [1] : vector<8x2xf32> to vector<8xf32>
      %64 = vector.shape_cast %63 : vector<8xf32> to vector<8x1xf32>
      %65 = vector.broadcast %64 : vector<8x1xf32> to vector<8x2xf32>
      %66 = arith.subf %61, %65 : vector<8x2xf32>
      %67 = math.exp %66 : vector<8x2xf32>
      %cst_39 = arith.constant dense<0.000000e+00> : vector<8xf32>
      %68 = vector.multi_reduction <add>, %67, %cst_39 [1] : vector<8x2xf32> to vector<8xf32>
      %69 = vector.shape_cast %68 : vector<8xf32> to vector<8x1xf32>
      %70 = math.log %69 : vector<8x1xf32>
      %71 = arith.addf %64, %70 : vector<8x1xf32>
      %72 = tpu.iota {dimensions = array<i32: 1>} : vector<8x2xi32>
      %73 = vector.broadcast %62 : vector<8x1xi32> to vector<8x2xi32>
      %74 = arith.cmpi eq, %72, %73 : vector<8x2xi32>
      %cst_40 = arith.constant 0.000000e+00 : f32
      %75 = vector.broadcast %cst_40 : f32 to vector<8x2xf32>
      %76 = arith.select %74, %61, %75 : vector<8x2xi1>, vector<8x2xf32>
      %cst_41 = arith.constant dense<0.000000e+00> : vector<8xf32>
      %77 = vector.multi_reduction <add>, %76, %cst_41 [1] : vector<8x2xf32> to vector<8xf32>
      %78 = vector.shape_cast %77 : vector<8xf32> to vector<8x1xf32>
      %79 = arith.subf %71, %78 : vector<8x1xf32>
      %cst_42 = arith.constant dense<0.000000e+00> : vector<8xf32>
      %80 = vector.multi_reduction <add>, %61, %cst_42 [1] : vector<8x2xf32> to vector<8xf32>
      %81 = vector.shape_cast %80 : vector<8xf32> to vector<8x1xf32>
      %cst_43 = arith.constant 2.000000e+00 : f32
      %82 = vector.broadcast %cst_43 : f32 to vector<8x1xf32>
      %83 = arith.divf %81, %82 : vector<8x1xf32>
      %84 = arith.subf %71, %83 : vector<8x1xf32>
      %cst_44 = arith.constant 0.899999976 : f32
      %85 = vector.broadcast %cst_44 : f32 to vector<8x1xf32>
      %86 = arith.mulf %85, %79 : vector<8x1xf32>
      %cst_45 = arith.constant 1.000000e-01 : f32
      %87 = vector.broadcast %cst_45 : f32 to vector<8x1xf32>
      %88 = arith.mulf %87, %84 : vector<8x1xf32>
      %89 = arith.addf %86, %88 : vector<8x1xf32>
      %cst_46 = arith.constant dense<0.000000e+00> : vector<1xf32>
      %90 = vector.multi_reduction <add>, %89, %cst_46 [0] : vector<8x1xf32> to vector<1xf32>
      %91 = vector.shape_cast %90 : vector<1xf32> to vector<1x1xf32>
      %cst_47 = arith.constant 8.000000e+00 : f32
      %92 = vector.broadcast %cst_47 : f32 to vector<1x1xf32>
      %93 = arith.divf %91, %92 : vector<1x1xf32>
      %c0_48 = arith.constant 0 : index
      %c0_49 = arith.constant 0 : index
      %94 = vector.load %arg6[%c0_48, %c0_49] : memref<1x8xf32, #tpu.memory_space<vmem>>, vector<1x8xf32>
      %c0_50 = arith.constant 0 : index
      %c0_51 = arith.constant 0 : index
      %95 = vector.load %arg7[%c0_50, %c0_51] : memref<1x8xf32, #tpu.memory_space<vmem>>, vector<1x8xf32>
      %cst_52 = arith.constant 0.000000e+00 : f32
      %96 = vector.broadcast %cst_52 : f32 to vector<1x8xf32>
      %97 = arith.maximumf %94, %96 : vector<1x8xf32>
      %98 = arith.mulf %94, %95 : vector<1x8xf32>
      %99 = arith.subf %97, %98 : vector<1x8xf32>
      %100 = math.absf %94 : vector<1x8xf32>
      %cst_53 = arith.constant 0.000000e+00 : f32
      %101 = vector.broadcast %cst_53 : f32 to vector<1x8xf32>
      %102 = arith.subf %101, %100 : vector<1x8xf32>
      %103 = math.exp %102 : vector<1x8xf32>
      %104 = math.log1p %103 : vector<1x8xf32>
      %105 = arith.addf %99, %104 : vector<1x8xf32>
      %cst_54 = arith.constant dense<0.000000e+00> : vector<1xf32>
      %106 = vector.multi_reduction <add>, %105, %cst_54 [1] : vector<1x8xf32> to vector<1xf32>
      %107 = vector.shape_cast %106 : vector<1xf32> to vector<1x1xf32>
      %cst_55 = arith.constant 8.000000e+00 : f32
      %108 = vector.broadcast %cst_55 : f32 to vector<1x1xf32>
      %109 = arith.divf %107, %108 : vector<1x1xf32>
      %110 = tpu.iota {dimensions = array<i32: 0>} : vector<8x128xi32>
      %111 = tpu.iota {dimensions = array<i32: 1>} : vector<8x128xi32>
      %cst_56 = arith.constant 0.000000e+00 : f32
      %112 = vector.broadcast %cst_56 : f32 to vector<8x128xf32>
      %c0_i32_57 = arith.constant 0 : i32
      %113 = vector.broadcast %c0_i32_57 : i32 to vector<8x128xi32>
      %114 = arith.cmpi eq, %110, %113 : vector<8x128xi32>
      %c0_i32_58 = arith.constant 0 : i32
      %115 = vector.broadcast %c0_i32_58 : i32 to vector<8x128xi32>
      %116 = arith.cmpi eq, %111, %115 : vector<8x128xi32>
      %117 = arith.andi %114, %116 : vector<8x128xi1>
      %c0_i32_59 = arith.constant 0 : i32
      %118 = vector.broadcast %c0_i32_59 : i32 to vector<8x128xi32>
      %119 = arith.cmpi eq, %110, %118 : vector<8x128xi32>
      %c1_i32 = arith.constant 1 : i32
      %120 = vector.broadcast %c1_i32 : i32 to vector<8x128xi32>
      %121 = arith.cmpi eq, %111, %120 : vector<8x128xi32>
      %122 = arith.andi %119, %121 : vector<8x128xi1>
      %c0_i32_60 = arith.constant 0 : i32
      %123 = vector.broadcast %c0_i32_60 : i32 to vector<8x128xi32>
      %124 = arith.cmpi eq, %110, %123 : vector<8x128xi32>
      %c2_i32 = arith.constant 2 : i32
      %125 = vector.broadcast %c2_i32 : i32 to vector<8x128xi32>
      %126 = arith.cmpi eq, %111, %125 : vector<8x128xi32>
      %127 = arith.andi %124, %126 : vector<8x128xi1>
      %128 = vector.shape_cast %109 : vector<1x1xf32> to vector<1x1xf32>
      %129 = vector.broadcast %128 : vector<1x1xf32> to vector<8x128xf32>
      %130 = arith.select %127, %129, %112 : vector<8x128xi1>, vector<8x128xf32>
      %131 = vector.shape_cast %93 : vector<1x1xf32> to vector<1x1xf32>
      %132 = vector.broadcast %131 : vector<1x1xf32> to vector<8x128xf32>
      %133 = arith.select %122, %132, %130 : vector<8x128xi1>, vector<8x128xf32>
      %134 = vector.shape_cast %60 : vector<1x1xf32> to vector<1x1xf32>
      %135 = vector.broadcast %134 : vector<1x1xf32> to vector<8x128xf32>
      %136 = arith.select %117, %135, %133 : vector<8x128xi1>, vector<8x128xf32>
      %c0_61 = arith.constant 0 : index
      %c0_62 = arith.constant 0 : index
      %137 = vector.load %arg8[%c0_61, %c0_62] : memref<8x128xf32, #tpu.memory_space<vmem>>, vector<8x128xf32>
      tpu.vector_store %arg8[%c0_61, %c0_62], %136 {strides = array<i32>} : memref<8x128xf32, #tpu.memory_space<vmem>>, vector<8x128xf32>,
    } else {
    }
    return
  }
  func.func @transform_0(%arg0: i32, %arg1: i32) -> (i32, i32) {
    %c0_i32 = arith.constant 0 : i32
    %c0_i32_0 = arith.constant 0 : i32
    %c0_i32_1 = arith.constant 0 : i32
    return %c0_i32, %c0_i32_0 : i32, i32
  }
  func.func @transform_1(%arg0: i32, %arg1: i32) -> (i32, i32) {
    %c0_i32 = arith.constant 0 : i32
    %c0_i32_0 = arith.constant 0 : i32
    %c0_i32_1 = arith.constant 0 : i32
    return %c0_i32, %c0_i32_0 : i32, i32
  }
  func.func @transform_2(%arg0: i32, %arg1: i32) -> (i32, i32) {
    %c0_i32 = arith.constant 0 : i32
    return %arg0, %arg1 : i32, i32
  }
  func.func @transform_3(%arg0: i32, %arg1: i32) -> (i32, i32) {
    %c0_i32 = arith.constant 0 : i32
    %c0_i32_0 = arith.constant 0 : i32
    return %arg0, %c0_i32 : i32, i32
  }
  func.func @transform_4(%arg0: i32, %arg1: i32) -> (i32, i32) {
    %c0_i32 = arith.constant 0 : i32
    %c0_i32_0 = arith.constant 0 : i32
    %c0_i32_1 = arith.constant 0 : i32
    return %c0_i32, %c0_i32_0 : i32, i32
  }
  func.func @transform_5(%arg0: i32, %arg1: i32) -> (i32, i32) {
    %c0_i32 = arith.constant 0 : i32
    %c0_i32_0 = arith.constant 0 : i32
    %c0_i32_1 = arith.constant 0 : i32
    return %c0_i32, %c0_i32_0 : i32, i32
  }
  func.func @transform_6(%arg0: i32, %arg1: i32) -> (i32, i32) {
    %c0_i32 = arith.constant 0 : i32
    %c0_i32_0 = arith.constant 0 : i32
    return %arg0, %c0_i32 : i32, i32
  }
}

</mosaic_0001>

<bundles_post_ra>
// kernel: _fused_combined_loss.1
= control target key start
LH: loop header
LB: loop body
LE: loop exit
PB: predicated region body
PF: predicated region fallthrough
CT: control target
= control target key end

     0   :  { %v33_v0 = vlaneseq  ;;  %vm27_vm0 = vcmask 7168   ;;  %v210_v1 = vmov -1e+30   ;;  %vm41_vm1 = vcmask 130048   ;;  %s293_s2 = inlined_call_operand.vmem [shape: f32[8,16], index: 2, kind: input, shape index: {}]   ;;  %s294_s3 = inlined_call_operand.vmem [shape: s32[8,1], index: 3, kind: input, shape index: {}]   ;;  %s295_s1 = inlined_call_operand.vmem [shape: s32[8,1], index: 1, kind: input, shape index: {}]   ;;  %s296_s0 = inlined_call_operand.vmem [shape: f32[8,2], index: 0, kind: input, shape index: {}]   ;;  %s297_s4 = inlined_call_operand.vmem [shape: f32[1,8], index: 4, kind: input, shape index: {}]   ;;  %s298_s5 = inlined_call_operand.vmem [shape: f32[1,8], index: 5, kind: input, shape index: {}]   ;;  %s299_s6 = inlined_call_operand.vmem [shape: f32[8,128], index: 6, kind: output, shape index: {}]  }
   0x1   :  { %28 = vst.msk [vmem:[#allocation2] sm:$0xff] %vm27_vm0, %v210_v1  ;;  %v31_v2 = vld [vmem:[%s293_s2] sm:$0xff]  ;;  %v211_v6 = vmov 0   ;;  %v212_v8 = vmov 0.0   ;;  %vm106_vm4 = vcmask 15360   ;;  %vm164_vm7 = vcmask 57344  }
   0x2   :  { %v253_v3 = vand.u32 127, %v33_v0  ;;  %194 = vset.pattern.permute.xlu0 %v211_v6  ;;  %195 = vset.pattern.permute.xlu1 %v211_v6  ;;  %v32_v7 = vld [vmem:[%s294_s3] sm:$0xff]  ;;  %29 = vst.msk [vmem:[#allocation3] sm:$0xff] %vm27_vm0, %v212_v8  ;;  %30 = vst.msk [vmem:[#allocation4] sm:$0xff] %vm27_vm0, %v212_v8 }
   0x3   :  { %67 = vperm.xlu1 %195, %v32_v7   ;;  %v105_v13 = vld [vmem:[%s295_s1] sm:$0xff] }
   0x4   :  { %vm38_vm2 = vcmp.lt.s32.totalorder %v253_v3, 16  ;;  %v104_v22 = vld [vmem:[%s296_s0] sm:$0xff]  ;;  %vm174_vm9 = vcmp.eq.s32.totalorder %v253_v3, 2  ;;  %vm172_vm11 = vcmp.eq.s32.totalorder %v253_v3, 1  ;;  %vm170_vm12 = vcmp.eq.s32.totalorder %v253_v3, 0 }
   0x5   :  { %v39_v4 = vsel %vm38_vm2, %v31_v2, -1e+30  ;;  %v107_v23 = vsel %vm106_vm4, %v104_v22, -inf  ;;  %v145_v25 = vld [vmem:[%s297_s4] sm:$0x1]  ;;  %v128_v62 = vsel %vm106_vm4, %v104_v22, 0.0 }
   0x6   :  { %v42_v5 = vsel %vm41_vm1, %v39_v4, -inf  ;;  %v150_v26 = vand.u32 2147483647, %v145_v25  ;;  %v146_v49 = vld [vmem:[%s298_s5] sm:$0x1]  ;;  %v147_v56 = vmax.f32 %v145_v25, 0.0 }
   0x7   :  { %43 = vmax.xlane.f32.xlu0 %v42_v5  ;;  %v148_v57 = vmul.f32 %v146_v49, %v145_v25 }
   0x8   :  { %v40_v9 = vld [vmem:[#allocation2] sm:$0xff]  ;;  %v151_v27 = vsub.f32 0.0, %v150_v26 }
   0x9   :  { %v49_v30 = vld [vmem:[#allocation3] sm:$0xff]  ;;  %v65_v34 = vld [vmem:[#allocation4] sm:$0xff]  ;;  %v149_v63 = vsub.f32 %v147_v56, %v148_v57 }
   0xa   :  { %v152_v28 = vmul.f32 1.442695, %v151_v27 }
  0x82   :  { %v68_v17 = vpop.permute.xlu1 %67 }
  0x83   :  { %vm69_vm3 = vcmp.eq.s32.totalorder %v253_v3, %v68_v17 }
  0x84   :  { %v70_v19 = vsel %vm69_vm3, %v31_v2, 0.0 }
  0x85   :  { %v71_v21 = vsel %vm41_vm1, %v70_v19, 0.0 }
  0x94   :  { %v44_v10 = vpop.xlane.xlu0 %43 }
  0x95   :  { %v45_v11 = vmax.f32 %v40_v9, %v44_v10 }
  0x97   :  { %v46_v12 = vsub.f32 %v40_v9, %v45_v11  ;;  %76 = vst.msk [vmem:[#allocation2] sm:$0xff] %vm27_vm0, %v45_v11  ;;  %53 = vperm.xlu0 %194, %v45_v11  }
  0x99   :  { %v47_v24 = vmul.f32 1.442695, %v46_v12 }
  0x9b   :  { %120 = vperm.xlu0 %194, %v105_v13  }
  0x9e   :  { %v81_v47 = vld [vmem:[#allocation2] sm:$0xff] }
 0x116   :  { %v54_v14 = vpop.permute.xlu0 %53 }
 0x117   :  { %v56_v15 = vsub.f32 %v39_v4, %v54_v14 }
 0x119   :  { %v57_v16 = vmul.f32 1.442695, %v56_v15 }
 0x11a   :  { %v121_v58 = vpop.permute.xlu0 %120 }
 0x11b   :  { %196 = vpow2.f32 %v57_v16  ;;  %vm122_vm6 = vcmp.eq.s32.totalorder %v253_v3, %v121_v58 }
 0x11c   :  { %198 = vpow2.f32 %v47_v24  ;;  %v123_v2 = vsel %vm122_vm6, %v104_v22, 0.0 }
 0x11d   :  { %200 = vpow2.f32 %v152_v28  ;;  %v124_v5 = vsel %vm106_vm4, %v123_v2, 0.0 }
 0x125   :  { %v197_v18 = vpop.eup %196 }
 0x126   :  { %v59_v20 = vsel %vm41_vm1, %v197_v18, 0.0  ;;  %v199_v29 = vpop.eup %198 }
 0x127   :  { %60 = vadd.xlane.f32.xlu1 %v59_v20  ;;  %v50_v31 = vmul.f32 %v199_v29, %v49_v30  ;;  %v201_v37 = vpop.eup %200  ;;  %v89_v30 = vshrl.u32 %v33_v0, 7 }
 0x128   :  { %v154_v41 = vadd.f32 1.0, %v201_v37  ;;  %v157_v43 = vmul.f32 -0.5, %v201_v37  ;;  %v160_v54 = vand.u32 2147483647, %v201_v37 }
 0x129   :  { %vm169_vm8 = vcmp.eq.s32.totalorder %v89_v30, 0 }
 0x12a   :  { %v158_v50 = vadd.f32 1.0, %v157_v43  ;;  %vm161_vm5 = vcmp.lt.f32.partialorder %v160_v54, 0.0004427343  ;;  %vm175_vm10 = vmand %vm169_vm8, %vm174_vm9 }
 0x12b   :  { %72 = vadd.xlane.f32.xlu1 %v71_v21  ;;  %vm173_vm13 = vmand %vm169_vm8, %vm172_vm11 }
 0x12c   :  { %v159_v60 = vmul.f32 %v201_v37, %v158_v50  ;;  %vm171_vm14 = vmand %vm169_vm8, %vm170_vm12 }
 0x12f   :  { %108 = vmax.xlane.f32.xlu1 %v107_v23 }
 0x1b4   :  { %v61_v32 = vpop.xlane.xlu1 %60 }
 0x1b5   :  { %v62_v33 = vadd.f32 %v61_v32, %v50_v31 }
 0x1b7   :  { %64 = vst.msk [vmem:[#allocation3] sm:$0xff] %vm27_vm0, %v62_v33  ;;  %v178_v33 = vsub.s32 0, %v89_v30 }
 0x1b8   :  { %v73_v35 = vpop.xlane.xlu1 %72 }
 0x1b9   :  { %v74_v36 = vadd.f32 %v73_v35, %v65_v34 }
 0x1bb   :  { %75 = vst.msk [vmem:[#allocation4] sm:$0xff] %vm27_vm0, %v74_v36 }
 0x1bc   :  { %v109_v38 = vpop.xlane.xlu1 %108 }
 0x1bd   :  { %v110_v39 = vsub.f32 %v104_v22, %v109_v38 }
 0x1be   :  { %v82_v40 = vld [vmem:[#allocation3] sm:$0xff] }
 0x1bf   :  { %v111_v42 = vmul.f32 1.442695, %v110_v39  ;;  %202 = vlog2.f32 %v82_v40 }
 0x1c1   :  { %204 = vpow2.f32 %v111_v42 }
 0x1c2   :  { %206 = vlog2.f32 %v154_v41  ;;  %v86_v48 = vld [vmem:[#allocation4] sm:$0xff] }
 0x1c9   :  { %v203_v44 = vpop.eup %202 }
 0x1ca   :  { %v84_v45 = vmul.f32 0.6931472, %v203_v44 }
 0x1cb   :  { %v205_v46 = vpop.eup %204 }
 0x1cc   :  { %v207_v51 = vpop.eup %206  ;;  %v113_v52 = vsel %vm106_vm4, %v205_v46, 0.0  ;;  %v85_v53 = vadd.f32 %v84_v45, %v81_v47 }
 0x1cd   :  { %114 = vadd.xlane.f32.xlu0 %v113_v52  ;;  %v156_v59 = vmul.f32 0.6931472, %v207_v51 }
 0x1ce   :  { %v87_v55 = vsub.f32 %v85_v53, %v86_v48 }
 0x1cf   :  { %v162_v1 = vsel %vm161_vm5, %v159_v60, %v156_v59 }
 0x1d0   :  { %v94_v61 = vsel %vm27_vm0, %v87_v55, 0.0  ;;  %v163_v4 = vadd.f32 %v162_v1, %v149_v63 }
 0x1d1   :  { %95 = vadd.xlane.f32.xlu1 %v94_v61 }
 0x1d2   :  { %v165_v6 = vsel %vm164_vm7, %v163_v4, 0.0 }
 0x1d5   :  { %129 = vadd.xlane.f32.xlu1 %v128_v62 }
 0x1d9   :  { %125 = vadd.xlane.f32.xlu1 %v124_v5 }
 0x1dd   :  { %166 = vadd.xlane.f32.xlu1 %v165_v6 }
 0x25a   :  { %v115_v7 = vpop.xlane.xlu0 %114 }
 0x25b   :  { %208 = vlog2.f32 %v115_v7 }
 0x25e   :  { %v96_v8 = vpop.xlane.xlu1 %95 }
 0x25f   :  { %v97_v9 = vrot.slane %v96_v8, 4 }
 0x261   :  { %v98_v10 = vadd.f32 %v97_v9, %v96_v8 }
 0x262   :  { %v130_v17 = vpop.xlane.xlu1 %129 }
 0x263   :  { %v99_v11 = vrot.slane %v98_v10, 2  ;;  %v132_v19 = vmul.f32 0.5, %v130_v17 }
 0x265   :  { %v100_v12 = vadd.f32 %v99_v11, %v98_v10  ;;  %v209_v15 = vpop.eup %208 }
 0x266   :  { %v117_v16 = vmul.f32 0.6931472, %v209_v15  ;;  %v126_v20 = vpop.xlane.xlu1 %125 }
 0x267   :  { %v101_v13 = vrot.slane %v100_v12, 1 }
 0x268   :  { %v118_v18 = vadd.f32 %v117_v16, %v109_v38 }
 0x269   :  { %v102_v14 = vadd.f32 %v101_v13, %v100_v12 }
 0x26a   :  { %v133_v21 = vsub.f32 %v118_v18, %v132_v19  ;;  %v127_v22 = vsub.f32 %v118_v18, %v126_v20  ;;  %v167_v31 = vpop.xlane.xlu1 %166 }
 0x26b   :  { %189 = vpush %v102_v14  ;;  %v168_v34 = vmul.f32 0.125, %v167_v31 }
 0x26c   :  { %v135_v23 = vmul.f32 0.1, %v133_v21  ;;  %v134_v24 = vmul.f32 0.9, %v127_v22 }
 0x26d   :  { %v179_v36 = vrot.slane %v168_v34, %v178_v33 }
 0x26e   :  { %v136_v25 = vadd.f32 %v135_v23, %v134_v24 }
 0x26f   :  { %v180_v38 = vsel %vm175_vm10, %v179_v36, 0.0 }
 0x270   :  { %v137_v26 = vrot.slane %v136_v25, 4 }
 0x272   :  { %v138_v27 = vadd.f32 %v137_v26, %v136_v25 }
 0x274   :  { %v139_v28 = vrot.slane %v138_v27, 2 }
 0x276   :  { %v140_v29 = vadd.f32 %v139_v28, %v138_v27 }
 0x278   :  { %v141_v32 = vrot.slane %v140_v29, 1 }
 0x27a   :  { %v142_v35 = vadd.f32 %v141_v32, %v140_v29 }
 0x27c   :  { %v144_v37 = vmul.f32 0.125, %v142_v35 }
 0x27e   :  { %v181_v0 = vsel %vm173_vm13, %v144_v37, %v180_v38 }
 0x29c   :  { %s190_s5 = spop %189 }
 0x29d   :  { %v182_v39 = vstv %s190_s5 }
 0x29e   :  { %v183_v40 = vsel %vm171_vm14, %v182_v39, %v181_v0 }
 0x29f   :  { %184 = vst [vmem:[%s299_s6] sm:$0xff] %v183_v40 }

</bundles_post_ra>
